<compile_context>
chip_gen: v7x
topology: tpu7x:2x2x1
jax: 0.10.0
libtpu: 0.0.40
codegen_flags: <defaults>
</compile_context>

<pallas_src>
import jax
import jax.numpy as jnp
from jax.experimental import pallas as pl
from jax.experimental.pallas import tpu as pltpu


def _packed_linear_kernel(x_ref, w_ref, o_ref):
    # y_packed = x_packed @ W_hat ; W_hat holds blockdiag(W_back.T), so this
    # plain (axis 1, axis 0) contraction is x @ W_back.T per b-wide lane group.
    o_ref[...] = jnp.dot(
        x_ref[...], w_ref[...], preferred_element_type=jnp.float32
    ).astype(o_ref.dtype)


def dynamics_back_forward(x, w_back, *, block_rows_packed=2048,
                          min_pallas_rows=512, out_dtype=None):
    """y = x @ w_back.T  (torch nn.Linear(bias=False) semantics).

    x:      [N, b]
    w_back: [b, b]   (`dynamics_back.dynamics.weight`, NOT transposed)
    """
    N, b = x.shape
    assert w_back.shape == (b, b)
    out_dtype = out_dtype or x.dtype

    # Deployment-size inputs (e.g. N=8 latent states): a standalone pallas_call
    # is pure launch + DMA-descriptor overhead; let XLA handle / fuse it.
    # TODO(synk): in the full gw_kae model, fuse this tiny linear into the
    # neighboring encoder/decoder matmul kernel instead of dispatching it.
    if N < min_pallas_rows:
        y = jnp.dot(x.astype(jnp.float32), w_back.T.astype(jnp.float32))
        return y.astype(out_dtype)

    # --- lane packing --------------------------------------------------------
    # Pack `pack` consecutive rows of x into one 128-wide row so vreg lanes,
    # VMEM tiles and vector stores are fully dense.
    pack = 128 // b if (b <= 128 and 128 % b == 0) else 1
    row_quantum = pack * 8                       # packed row count stays /8
    n_pad = pl.cdiv(N, row_quantum) * row_quantum
    if n_pad != N:
        x = jnp.pad(x, ((0, n_pad - N), (0, 0)))
    m = n_pad // pack                            # packed rows
    d = pack * b                                 # packed feature width (128)

    x_packed = x.reshape(m, d)                   # contiguous, free
    # One-time block-diagonal weight: blockdiag(W_back.T repeated `pack` times).
    w_hat = jnp.kron(jnp.eye(pack, dtype=w_back.dtype), w_back.T)
    w_hat = w_hat.astype(x_packed.dtype)

    # --- row tiling -----------------------------------------------------------
    # Large tiles (>= ~1 MiB of x per step) to amortize per-grid-step overhead,
    # but always >= 2 grid steps so both v7x TensorCores get work and DMA
    # overlaps compute.
    tm = min(block_rows_packed, m)
    if m >= 16 and pl.cdiv(m, tm) < 2:
        tm = max(8, (pl.cdiv(m, 2) + 7) // 8 * 8)
    grid = (pl.cdiv(m, tm),)

    in_bytes = jnp.dtype(x_packed.dtype).itemsize
    out_bytes = jnp.dtype(out_dtype).itemsize
    cost = pl.CostEstimate(
        flops=2 * m * d * d,
        transcendentals=0,
        bytes_accessed=m * d * (in_bytes + out_bytes) + d * d * in_bytes,
    )

    y_packed = pl.pallas_call(
        _packed_linear_kernel,
        out_shape=jax.ShapeDtypeStruct((m, d), out_dtype),
        grid=grid,
        in_specs=[
            pl.BlockSpec((tm, d), lambda i: (i, 0)),   # x rows: tiled over grid
            pl.BlockSpec((d, d), lambda i: (0, 0)),    # weight: resident in VMEM
        ],
        out_specs=pl.BlockSpec((tm, d), lambda i: (i, 0)),
        compiler_params=pltpu.CompilerParams(
            dimension_semantics=("parallel",),
        ),
        cost_estimate=cost,
    )(x_packed, w_hat)

    y = y_packed.reshape(n_pad, b)                # free un-pack
    return y[:N] if n_pad != N else y


def make_dynamics_back_weight(omega_weight):
    """Parameter setup (plain JAX, init-time only): W_back = pinverse(W_omega.T)."""
    return jnp.linalg.pinv(omega_weight.T)


if __name__ == "__main__":
    key = jax.random.PRNGKey(0)
    k_w, k_x, k_x2, k_x3 = jax.random.split(key, 4)

    b = 32   # Koopman / bottleneck dimension

    # Deterministic synthetic "omega.dynamics.weight" ([b, b]).
    omega_weight = jax.random.normal(k_w, (b, b), dtype=jnp.float32)
    w_back = make_dynamics_back_weight(omega_weight)

    # 1) deployment-size input (N=8): dispatches to the non-Pallas fast path.
    x_small = jax.random.normal(k_x, (8, b), dtype=jnp.float32)
    y_small = dynamics_back_forward(x_small, w_back)
    jax.block_until_ready(y_small)
    assert y_small.shape == (8, b)
    assert jnp.allclose(y_small, x_small @ w_back.T, atol=1e-4, rtol=1e-4)

    # 2) larger batch: exercises the lane-packed Pallas kernel with a
    #    multi-step "parallel" grid (block_rows_packed kept small here so the
    #    test shape stays modest while still pipelining 4 grid steps).
    n2 = 4096
    x2 = jax.random.normal(k_x2, (n2, b), dtype=jnp.float32)
    y2 = dynamics_back_forward(x2, w_back, block_rows_packed=256)
    jax.block_until_ready(y2)
    assert y2.shape == (n2, b)
    assert jnp.allclose(y2, x2 @ w_back.T, atol=1e-4, rtol=1e-4)

    # 3) ragged batch (N not a multiple of the 32-row packing quantum):
    #    exercises the zero-pad + un-pad path of the packed layout.
    n3 = 1000
    x3 = jax.random.normal(k_x3, (n3, b), dtype=jnp.float32)
    y3 = dynamics_back_forward(x3, w_back, block_rows_packed=256)
    jax.block_until_ready(y3)
    assert y3.shape == (n3, b)
    assert jnp.allclose(y3, x3 @ w_back.T, atol=1e-4, rtol=1e-4)

    print("KERNEL_OK")
</pallas_src>

<mosaic_0001>
module attributes {stable_mosaic.version = 11 : i64} {
  func.func @_packed_linear_kernel(%arg0: i32, %arg1: memref<256x128xf32, #tpu.memory_space<vmem>>, %arg2: memref<128x128xf32, #tpu.memory_space<vmem>>, %arg3: memref<256x128xf32, #tpu.memory_space<vmem>>) attributes {dimension_semantics = [#tpu.dimension_semantics<parallel>], iteration_bounds = array<i64: 4>, scalar_prefetch = 0 : i64, scratch_operands = 0 : i64, tpu.core_type = #tpu.core_type<tc>, window_params = [{transform_indices = @transform_0, window_bounds = array<i64: 256, 128>}, {pipeline_mode = #tpu.pipeline_mode<synchronous>, transform_indices = @transform_1, window_bounds = array<i64: 128, 128>}, {transform_indices = @transform_2, window_bounds = array<i64: 256, 128>}]} {
    %c0 = arith.constant 0 : index
    %c0_0 = arith.constant 0 : index
    %0 = vector.load %arg1[%c0, %c0_0] : memref<256x128xf32, #tpu.memory_space<vmem>>, vector<256x128xf32>
    %c0_1 = arith.constant 0 : index
    %c0_2 = arith.constant 0 : index
    %1 = vector.load %arg2[%c0_1, %c0_2] : memref<128x128xf32, #tpu.memory_space<vmem>>, vector<128x128xf32>
    %cst = arith.constant dense<0.000000e+00> : vector<256x128xf32>
    %2 = tpu.matmul %0, %1, %cst {dimension_numbers = #tpu.dot_dimension_numbers<[1], [0], [0], [1], [0, 0, 1, 1], [], []>} : vector<256x128xf32>, vector<128x128xf32>, vector<256x128xf32> -> vector<256x128xf32>
    %c0_3 = arith.constant 0 : index
    %c0_4 = arith.constant 0 : index
    %3 = vector.load %arg3[%c0_3, %c0_4] : memref<256x128xf32, #tpu.memory_space<vmem>>, vector<256x128xf32>
    tpu.vector_store %arg3[%c0_3, %c0_4], %2 {strides = array<i32>} : memref<256x128xf32, #tpu.memory_space<vmem>>, vector<256x128xf32>,
    return
  }
  func.func @transform_0(%arg0: i32) -> (i32, i32) {
    %c0_i32 = arith.constant 0 : i32
    %c0_i32_0 = arith.constant 0 : i32
    return %arg0, %c0_i32 : i32, i32
  }
  func.func @transform_1(%arg0: i32) -> (i32, i32) {
    %c0_i32 = arith.constant 0 : i32
    %c0_i32_0 = arith.constant 0 : i32
    %c0_i32_1 = arith.constant 0 : i32
    return %c0_i32, %c0_i32_0 : i32, i32
  }
  func.func @transform_2(%arg0: i32) -> (i32, i32) {
    %c0_i32 = arith.constant 0 : i32
    %c0_i32_0 = arith.constant 0 : i32
    return %arg0, %c0_i32 : i32, i32
  }
}

</mosaic_0001>

<bundles_post_ra>
// kernel: tpu_custom_call.1
= control target key start
LH: loop header
LB: loop body
LE: loop exit
PB: predicated region body
PF: predicated region fallthrough
CT: control target
= control target key end

     0   :  { %7 = vsyncpa [#allocation3], 0  ;;  %s1259_s0 = inlined_call_operand.hbm [shape: f32[1024,128], index: 0, kind: input, shape index: {}]   ;;  %s1260_s1 = inlined_call_operand.hbm [shape: f32[128,128], index: 1, kind: input, shape index: {}]   ;;  %s1261_s2 = inlined_call_operand.hbm [shape: f32[1024,128], index: 2, kind: output, shape index: {}]  }
   0x1   :  { %9 = vsyncpa [#allocation3 + $0x1], 0 }
   0x2   :  { %10 = vsyncpa [#allocation6], 0 }
   0x3   :  { %11 = vsyncpa [#allocation4], 0 }
   0x4   :  { %13 = vsyncpa [#allocation4 + $0x1], 0  ;;  %s988_s9 = smov 0   ;;  %s990_s10 = smov 0  }
   0x5   :  { %s992_s11 = smov 0   ;;  %s994_s12 = smov 0  }
   0x6 LB: > { %s1009_s13 = sadd.s32 4294967295, %s964_s12   ;;  %s581_s14 = sadd.s32 4294967294, %s964_s12   ;;  %s964_s12 = sphi %s994_s12, %s1280_s12   ;;  %s960_s11 = sphi %s992_s11, %s1279_s11   ;;  %s956_s10 = sphi %s990_s10, %s1278_s10   ;;  %s952_s9 = sphi %s988_s9, %s1277_s9  }
   0x7   : > { %p39_p0 = scmp.ne.s32.totalorder %s956_s10, %s952_s9  ;;  %p1262_p1 = scmp.eq.s32.totalorder %s1009_s13, 0 }
   0x8   : > { %p90_p3 = scmp.eq.s32.totalorder %s581_s14, 3  ;;  %p582_p5 = scmp.ge.s32.totalorder %s964_s12, 1 }
   0x9   : > { %p1018_p4 = por %p1262_p1, %p39_p0  ;;  %p97_p7 = scmp.lt.s32.totalorder %s964_s12, 5 }
   0xa   : > { %p1023_p6 = por %p90_p3, %p39_p0  ;;  %s966_s18 = smov [#allocation5]  }
   0xb   : > { %s1265_s15 = scalar_select %p1018_p4, 1, 0 }
   0xc   : > { %s1266_s16 = scalar_select %p1023_p6, 1, 0 }
   0xd   : > { %p1028_p8 = pnand %p582_p5, %p97_p7  ;;  %s109_s19 = sshll.u32 %s966_s18, 4  ;;  %s110_s19 = int_to_ptr.vmem [resolvable:$true] %s109_s19 }
   0xe   : > { %s1041_s21 = sadd.s32 1, %s964_s12   ;;  %s26_s22 = sadd.s32 1, %s960_s11 }
   0xf   : > { %s1267_s17 = scalar_select %p1028_p8, 1, 0 }
  0x10   : > { %p783_p9 = pneg %p1028_p8  ;;  %s23_s23 = ssub.s32 %s964_s12, %s1041_s21 }
  0x11   : > { %s836_s26 = scalar_lea.hbm %s1260_s1, 2048 }
  0x12   : > { %p1036_p10 = pnand %p783_p9, %p1262_p1  ;;  %p837_p11 = scmp.ne.s32.totalorder %s1260_s1, %s836_s26 }
  0x13   : > { %p843_p3 = scmp.lt.u32.totalorder %s836_s26, %s1260_s1 }
  0x14   : > { %p838_p12 = pneg %p1036_p10 }
  0x16   : > { %p839_p13 = pnand %p838_p12, %p837_p11 }
  0x18   : > { %p840_p0 = pneg %p839_p13 }
  0x1a   : > { %p845_p5 = pnand %p843_p3, %p840_p0 }
  0x1c   : > { %848 = shalt.err (!%p845_p5)
}
  0x1d   : > { %s849_s3 = scalar_lea.vmem %s110_s19, 2048  ;;  %p857_p2 = scmp.lt.s32.totalorder %s110_s19, %s110_s19 }
  0x1e   : > { %p850_p7 = scmp.ne.s32.totalorder %s110_s19, %s849_s3  ;;  %p858_p6 = scmp.lt.s32.totalorder %s849_s3, %s849_s3 }
  0x20   : > { %p852_p9 = pnand %p850_p7, %p838_p12  ;;  %p859_p4 = por %p858_p6, %p857_p2 }
  0x22   : > { %p853_p1 = pneg %p852_p9 }
  0x24   : > { %p860_p8 = pnand %p859_p4, %p853_p1 }
  0x26   : > { %863 = shalt.err (!%p860_p8)
}
  0x27   : > { %s967_s4 = smov 128   ;;  %s968_s5 = smov 8  }
  0x28   : > { %786 = dma.hbm_to_vmem [thread:$0]  (!%p1036_p10), %s1260_s1, 2048, %s110_s19, [#allocation6], %s967_s4, %s967_s4, %s968_s5  }
  0x29   : > { %p24_p1 = scmp.eq.s32.totalorder %s23_s23, 0  ;;  %p33_p2 = scmp.ne.s32.totalorder %s960_s11, %s956_s10 }
  0x2a   : > { %p34_p4 = scmp.eq.s32.totalorder %s964_s12, 0  ;;  %p796_p6 = scmp.lt.s32.totalorder %s964_s12, 4 }
  0x2b   : > { %s1070_s8 = scalar_select %p24_p1, %s960_s11, %s26_s22  }
  0x2c   : > { %p35_p8 = por %p34_p4, %p33_p2  ;;  %p1269_p11 = scmp.eq.s32.totalorder %s1009_s13, 3 }
  0x2d   : > { %s123_s18 = sand.u32 1, %s960_s11   ;;  %s597_s20 = sshll.u32 %s964_s12, 12 }
  0x2e   : > { %p1074_p12 = por %p1269_p11, %p33_p2  ;;  %s585_s24 = sshll.u32 %s123_s18, 8 }
  0x2f   : > { %s1083_s27 = scalar_lea.hbm %s1259_s0, %s597_s20  ;;  %s127_s19 = scalar_lea.vmem [#allocation2], %s585_s24 }
  0x30   : > { %s134_s22 = sshll.u32 %s127_s19, 4  ;;  %p1085_p10 = pnand %p796_p6, %p35_p8  ;;  %s1089_s22 = int_to_ptr.vmem [resolvable:$true] %s134_s22 }
  0x31   : > { %s1091_s28 = scalar_lea.sflag [#allocation3], %s123_s18  ;;  %s864_s29 = scalar_lea.hbm %s1083_s27, 4096 }
  0x32   : > { %p865_p13 = scmp.ne.s32.totalorder %s1083_s27, %s864_s29  ;;  %p866_p0 = pneg %p1085_p10 }
  0x33   : > { %s869_s6 = scalar_lea.hbm %s1259_s0, 16384  ;;  %p870_p7 = scmp.lt.u32.totalorder %s1083_s27, %s1259_s0 }
  0x34   : > { %p867_p3 = pnand %p866_p0, %p865_p13  ;;  %p871_p9 = scmp.lt.u32.totalorder %s869_s6, %s864_s29 }
  0x35   : > { %p873_p2 = scmp.lt.u32.totalorder %s864_s29, %s1083_s27 }
  0x36   : > { %p868_p5 = pneg %p867_p3  ;;  %p872_p1 = por %p871_p9, %p870_p7 }
  0x38   : > { %p874_p4 = por %p873_p2, %p872_p1 }
  0x3a   : > { %p875_p6 = pnand %p874_p4, %p868_p5 }
  0x3c   : > { %878 = shalt.err (!%p875_p6)
}
  0x3d   : > { %s879_s18 = scalar_lea.vmem %s1089_s22, 4096  ;;  %s969_s24 = smov [#allocation2]  }
  0x3e   : > { %p880_p8 = scmp.ne.s32.totalorder %s1089_s22, %s879_s18  ;;  %s884_s25 = sshll.u32 %s969_s24, 4  ;;  %s885_s25 = int_to_ptr.vmem [resolvable:$false] %s884_s25 }
  0x3f   : > { %s886_s26 = scalar_lea.vmem %s885_s25, 8192  ;;  %p887_p3 = scmp.lt.s32.totalorder %s1089_s22, %s885_s25 }
  0x40   : > { %p882_p11 = pnand %p880_p8, %p866_p0  ;;  %p888_p7 = scmp.lt.s32.totalorder %s886_s26, %s879_s18 }
  0x42   : > { %p883_p13 = pneg %p882_p11  ;;  %p889_p9 = por %p888_p7, %p887_p3 }
  0x44   : > { %p890_p1 = pnand %p889_p9, %p883_p13 }
  0x46   : > { %893 = shalt.err (!%p890_p1)
}
  0x47   : > { %790 = dma.hbm_to_vmem [thread:$0]  (!%p1085_p10), %s1083_s27, 4096, %s1089_s22, %s1091_s28, %s967_s4, %s967_s4, %s968_s5  }
  0x48   : > { %p1272_p0 = scmp.ne.s32.totalorder %s1267_s17, 0 }
  0x49   : > { %s1125_s19 = sand.u32 (!%p1272_p0), 1, %s956_s10   ;;  %p1273_p5 = scmp.ne.s32.totalorder (!%p1272_p0), %s1265_s15, 0 }
  0x4a   : > { %146 = sbr.rel (%p1272_p0) target bundleno = 376 (0x178), region = 28  ;;  %s589_s29 = sshll.u32 (!%p1272_p0), %s1125_s19, 8 }
  0x4b   : > { %s149_s30 = scalar_lea.sflag (!%p1272_p0), [#allocation3], %s1125_s19  ;;  %s1131_s23 = scalar_lea.vmem (!%p1272_p0), [#allocation2], %s589_s29 }
  0x51   : > { %939 = dma.done.wait (%p1273_p5), %s149_s30, 4096  }
  0x52   : > { %941 = vsyncadd (%p1273_p5), %s149_s30, 4294963200  ;;  %p1274_p10 = scmp.eq.s32.totalorder %s1009_s13, 0 }
  0x54   : > { %943 = dma.done.wait (%p1274_p10), [#allocation6], 2048   ;;  %p1275_p2 = pmov %p1274_p10 }
  0x55   : > { %v211_v0 = vld [vmem:[#allocation5] sm:$0xff]  ;;  %v212_v1 = vld [vmem:[#allocation5 + $0x8] sm:$0xff]  ;;  %v213_v2 = vld [vmem:[#allocation5 + $0x10] sm:$0xff]  ;;  %s1175_s15 = scalar_lea.vmem [#allocation7], %s589_s29  ;;  %s598_s17 = sshll.u32 %s1009_s13, 12 }
  0x56   : > { %945 = vsyncadd (%p1275_p2), [#allocation6], 4294965248  ;;  %v727_v3 = vpack.c.bf16 %v212_v1, %v211_v0  ;;  %v214_v4 = vld [vmem:[#allocation5 + $0x18] sm:$0xff]  ;;  %v215_v6 = vld [vmem:[#allocation5 + $0x20] sm:$0xff]  ;;  %s498_s4 = sshll.u32 %s1175_s15, 4  ;;  %s1210_s22 = scalar_lea.hbm %s1261_s2, %s598_s17  ;;  %s1212_s4 = int_to_ptr.vmem [resolvable:$true] %s498_s4 }
  0x57   : > { %v731_v5 = vpack.c.bf16 %v214_v4, %v213_v2  ;;  %v216_v7 = vld [vmem:[#allocation5 + $0x28] sm:$0xff]  ;;  %v179_v9 = vld [vmem:[%s1131_s23] sm:$0xff]  ;;  %v217_v11 = vld [vmem:[#allocation5 + $0x30] sm:$0xff]  ;;  %s485_s13 = scalar_lea.sflag [#allocation4], %s1125_s19  ;;  %s894_s28 = scalar_lea.vmem %s1212_s4, 4096 }
  0x58   : > { %728 = vmatprep.subr.bf16.mxu0 %v727_v3  ;;  %759 = vmatprep.subr.bf16.mxu1 %v727_v3  ;;  %v735_v8 = vpack.c.bf16 %v216_v7, %v215_v6  ;;  %v195_v10 = vld [vmem:[%s1131_s23 + $0x80] sm:$0xff]  ;;  %v218_v12 = vld [vmem:[#allocation5 + $0x38] sm:$0xff]  ;;  %v220_v15 = vld [vmem:[#allocation5 + $0x48] sm:$0xff]  ;;  %p895_p4 = scmp.ne.s32.totalorder %s1212_s4, %s894_s28  ;;  %s970_s3 = smov [#allocation7]  }
  0x59   : > { %730 = vmatpush3.bf16.msra.mxu0 %v727_v3  ;;  %767 = vmatpush3.bf16.msra.mxu1 %v727_v3  ;;  %v739_v13 = vpack.c.bf16 %v218_v12, %v217_v11  ;;  %v219_v14 = vld [vmem:[#allocation5 + $0x40] sm:$0xff]  ;;  %v221_v17 = vld [vmem:[#allocation5 + $0x50] sm:$0xff]  ;;  %v222_v18 = vld [vmem:[#allocation5 + $0x58] sm:$0xff]  ;;  %s898_s6 = sshll.u32 %s970_s3, 4  ;;  %s899_s6 = int_to_ptr.vmem [resolvable:$false] %s898_s6 }
  0x5a   : > { %732 = vmatprep.subr.bf16.mxu0 %v731_v5  ;;  %760 = vmatprep.subr.bf16.mxu1 %v731_v5  ;;  %v743_v16 = vpack.c.bf16 %v220_v15, %v219_v14  ;;  %v747_v19 = vpack.c.bf16 %v222_v18, %v221_v17  ;;  %v223_v20 = vld [vmem:[#allocation5 + $0x60] sm:$0xff]  ;;  %v224_v21 = vld [vmem:[#allocation5 + $0x68] sm:$0xff]  ;;  %v225_v23 = vld [vmem:[#allocation5 + $0x70] sm:$0xff]  ;;  %p896_p6 = pnand %p895_p4, %p1074_p12  ;;  %s900_s7 = scalar_lea.vmem %s899_s6, 8192 }
  0x5b   : > { %679 = vmatprep.mubr.f32.mxu0 %v179_v9  ;;  %703 = vmatprep.mubr.f32.mxu1 %v195_v10  ;;  %v751_v22 = vpack.c.bf16 %v224_v21, %v223_v20  ;;  %v226_v24 = vld [vmem:[#allocation5 + $0x78] sm:$0xff]  ;;  %v180_v26 = vld [vmem:[%s1131_s23 + $0x8] sm:$0xff]  ;;  %v181_v28 = vld [vmem:[%s1131_s23 + $0x10] sm:$0xff]  ;;  %p901_p11 = scmp.lt.s32.totalorder %s1212_s4, %s899_s6  ;;  %p902_p13 = scmp.lt.s32.totalorder %s900_s7, %s894_s28 }
  0x5c   : > { %v755_v25 = vpack.c.bf16 %v226_v24, %v225_v23  ;;  %v196_v27 = vld [vmem:[%s1131_s23 + $0x88] sm:$0xff]  ;;  %v197_v29 = vld [vmem:[%s1131_s23 + $0x90] sm:$0xff]  ;;  %v182_v30 = vld [vmem:[%s1131_s23 + $0x18] sm:$0xff]  ;;  %p897_p8 = pneg %p896_p6 }
  0x5d   : > { %734 = vmatpush3.bf16.msra.mxu0 %v731_v5  ;;  %768 = vmatpush3.bf16.msra.mxu1 %v731_v5  ;;  %v198_v31 = vld [vmem:[%s1131_s23 + $0x98] sm:$0xff]  ;;  %v183_v32 = vld [vmem:[%s1131_s23 + $0x20] sm:$0xff]  ;;  %v184_v34 = vld [vmem:[%s1131_s23 + $0x28] sm:$0xff]  ;;  %p903_p3 = por %p902_p13, %p901_p11 }
  0x5e   : > { %736 = vmatprep.subr.bf16.mxu0 %v735_v8  ;;  %761 = vmatprep.subr.bf16.mxu1 %v735_v8  ;;  %v199_v33 = vld [vmem:[%s1131_s23 + $0xa0] sm:$0xff]  ;;  %v200_v35 = vld [vmem:[%s1131_s23 + $0xa8] sm:$0xff]  ;;  %v185_v36 = vld [vmem:[%s1131_s23 + $0x30] sm:$0xff] }
  0x5f   : > { %v201_v37 = vld [vmem:[%s1131_s23 + $0xb0] sm:$0xff]  ;;  %v186_v38 = vld [vmem:[%s1131_s23 + $0x38] sm:$0xff]  ;;  %v187_v40 = vld [vmem:[%s1131_s23 + $0x40] sm:$0xff]  ;;  %p904_p7 = pnand %p903_p3, %p897_p8 }
  0x60   : > { %v202_v39 = vld [vmem:[%s1131_s23 + $0xb8] sm:$0xff]  ;;  %v203_v41 = vld [vmem:[%s1131_s23 + $0xc0] sm:$0xff]  ;;  %v188_v42 = vld [vmem:[%s1131_s23 + $0x48] sm:$0xff] }
  0x61   : > { %738 = vmatpush3.bf16.msra.mxu0 %v735_v8  ;;  %769 = vmatpush3.bf16.msra.mxu1 %v735_v8  ;;  %v204_v43 = vld [vmem:[%s1131_s23 + $0xc8] sm:$0xff]  ;;  %v189_v44 = vld [vmem:[%s1131_s23 + $0x50] sm:$0xff]  ;;  %v190_v46 = vld [vmem:[%s1131_s23 + $0x58] sm:$0xff] }
  0x62   : > { %740 = vmatprep.subr.bf16.mxu0 %v739_v13  ;;  %762 = vmatprep.subr.bf16.mxu1 %v739_v13  ;;  %v205_v45 = vld [vmem:[%s1131_s23 + $0xd0] sm:$0xff]  ;;  %v206_v47 = vld [vmem:[%s1131_s23 + $0xd8] sm:$0xff]  ;;  %v191_v48 = vld [vmem:[%s1131_s23 + $0x60] sm:$0xff] }
  0x63   : > { %v207_v49 = vld [vmem:[%s1131_s23 + $0xe0] sm:$0xff]  ;;  %v192_v50 = vld [vmem:[%s1131_s23 + $0x68] sm:$0xff]  ;;  %v193_v52 = vld [vmem:[%s1131_s23 + $0x70] sm:$0xff] }
  0x64   : > { %v208_v51 = vld [vmem:[%s1131_s23 + $0xe8] sm:$0xff]  ;;  %v209_v53 = vld [vmem:[%s1131_s23 + $0xf0] sm:$0xff]  ;;  %v194_v54 = vld [vmem:[%s1131_s23 + $0x78] sm:$0xff] }
  0x65   : > { %742 = vmatpush3.bf16.msra.mxu0 %v739_v13  ;;  %770 = vmatpush3.bf16.msra.mxu1 %v739_v13  ;;  %v210_v55 = vld [vmem:[%s1131_s23 + $0xf8] sm:$0xff] }
  0x66   : > { %744 = vmatprep.subr.bf16.mxu0 %v743_v16  ;;  %763 = vmatprep.subr.bf16.mxu1 %v743_v16 }
  0x69   : > { %746 = vmatpush3.bf16.msra.mxu0 %v743_v16  ;;  %771 = vmatpush3.bf16.msra.mxu1 %v743_v16 }
  0x6a   : > { %748 = vmatprep.subr.bf16.mxu0 %v747_v19  ;;  %764 = vmatprep.subr.bf16.mxu1 %v747_v19 }
  0x6d   : > { %750 = vmatpush3.bf16.msra.mxu0 %v747_v19  ;;  %772 = vmatpush3.bf16.msra.mxu1 %v747_v19 }
  0x6e   : > { %752 = vmatprep.subr.bf16.mxu0 %v751_v22  ;;  %765 = vmatprep.subr.bf16.mxu1 %v751_v22 }
  0x71   : > { %754 = vmatpush3.bf16.msra.mxu0 %v751_v22  ;;  %773 = vmatpush3.bf16.msra.mxu1 %v751_v22 }
  0x72   : > { %756 = vmatprep.subr.bf16.mxu0 %v755_v25  ;;  %766 = vmatprep.subr.bf16.mxu1 %v755_v25 }
  0x75   : > { %758 = vmatpush3.bf16.msra.mxu0 %v755_v25  ;;  %774 = vmatpush3.bf16.msra.mxu1 %v755_v25 }
  0x78   : > { %680 = vmatmul.mubr.f32.vlgmr.msra.gmra.mrb[0].mxu0 %v180_v26  ;;  %704 = vmatmul.mubr.f32.vlgmr.msra.gmra.mrb[0].mxu1 %v196_v27 }
  0x79   : > { %682 = vmatprep.mubr.f32.mxu0 %v181_v28  ;;  %706 = vmatprep.mubr.f32.mxu1 %v197_v29 }
  0x7c   : > { %683 = vmatmul.mubr.f32.gmra.mrb[2].mxu0 %v182_v30  ;;  %707 = vmatmul.mubr.f32.gmra.mrb[2].mxu1 %v198_v31 }
  0x7d   : > { %685 = vmatprep.mubr.f32.mxu0 %v183_v32  ;;  %709 = vmatprep.mubr.f32.mxu1 %v199_v33 }
  0x80   : > { %686 = vmatmul.mubr.f32.gmra.mrb[4].mxu0 %v184_v34  ;;  %710 = vmatmul.mubr.f32.gmra.mrb[4].mxu1 %v200_v35 }
  0x81   : > { %688 = vmatprep.mubr.f32.mxu0 %v185_v36  ;;  %712 = vmatprep.mubr.f32.mxu1 %v201_v37 }
  0x84   : > { %689 = vmatmul.mubr.f32.gmra.mrb[6].mxu0 %v186_v38  ;;  %713 = vmatmul.mubr.f32.gmra.mrb[6].mxu1 %v202_v39 }
  0x85   : > { %691 = vmatprep.mubr.f32.mxu0 %v187_v40  ;;  %715 = vmatprep.mubr.f32.mxu1 %v203_v41 }
  0x88   : > { %692 = vmatmul.mubr.f32.gmra.mrb[8].mxu0 %v188_v42  ;;  %716 = vmatmul.mubr.f32.gmra.mrb[8].mxu1 %v204_v43 }
  0x89   : > { %694 = vmatprep.mubr.f32.mxu0 %v189_v44  ;;  %718 = vmatprep.mubr.f32.mxu1 %v205_v45 }
  0x8c   : > { %695 = vmatmul.mubr.f32.gmra.mrb[10].mxu0 %v190_v46  ;;  %719 = vmatmul.mubr.f32.gmra.mrb[10].mxu1 %v206_v47 }
  0x8d   : > { %697 = vmatprep.mubr.f32.mxu0 %v191_v48  ;;  %721 = vmatprep.mubr.f32.mxu1 %v207_v49 }
  0x90   : > { %698 = vmatmul.mubr.f32.gmra.mrb[12].mxu0 %v192_v50  ;;  %722 = vmatmul.mubr.f32.gmra.mrb[12].mxu1 %v208_v51 }
  0x91   : > { %700 = vmatprep.mubr.f32.mxu0 %v193_v52  ;;  %724 = vmatprep.mubr.f32.mxu1 %v209_v53 }
  0x94   : > { %701 = vmatmul.mubr.f32.gmra.mrb[14].mxu0 %v194_v54  ;;  %725 = vmatmul.mubr.f32.gmra.mrb[14].mxu1 %v210_v55 }
 0x14b   : > { %v681_v56 = vpop.f32.mrb[0].mxu0  ;;  %v705_v57 = vpop.f32.mrb[0].mxu1 }
 0x14c   : > { %453 = vst [vmem:[%s1175_s15 + $0x8] sm:$0xff] %v681_v56  ;;  %469 = vst [vmem:[%s1175_s15 + $0x88] sm:$0xff] %v705_v57  ;;  %v293_v58 = vpop.f32.mrb[1].mxu0  ;;  %v373_v59 = vpop.f32.mrb[1].mxu1 }
 0x14d   : > { %452 = vst [vmem:[%s1175_s15] sm:$0xff] %v293_v58  ;;  %468 = vst [vmem:[%s1175_s15 + $0x80] sm:$0xff] %v373_v59 }
 0x14f   : > { %v684_v60 = vpop.f32.mrb[2].mxu0  ;;  %v708_v61 = vpop.f32.mrb[2].mxu1 }
 0x150   : > { %455 = vst [vmem:[%s1175_s15 + $0x18] sm:$0xff] %v684_v60  ;;  %471 = vst [vmem:[%s1175_s15 + $0x98] sm:$0xff] %v708_v61  ;;  %v303_v62 = vpop.f32.mrb[3].mxu0  ;;  %v383_v63 = vpop.f32.mrb[3].mxu1 }
 0x151   : > { %454 = vst [vmem:[%s1175_s15 + $0x10] sm:$0xff] %v303_v62  ;;  %470 = vst [vmem:[%s1175_s15 + $0x90] sm:$0xff] %v383_v63 }
 0x153   : > { %v687_v0 = vpop.f32.mrb[4].mxu0  ;;  %v711_v1 = vpop.f32.mrb[4].mxu1 }
 0x154   : > { %457 = vst [vmem:[%s1175_s15 + $0x28] sm:$0xff] %v687_v0  ;;  %473 = vst [vmem:[%s1175_s15 + $0xa8] sm:$0xff] %v711_v1  ;;  %v313_v2 = vpop.f32.mrb[5].mxu0  ;;  %v393_v3 = vpop.f32.mrb[5].mxu1 }
 0x155   : > { %456 = vst [vmem:[%s1175_s15 + $0x20] sm:$0xff] %v313_v2  ;;  %472 = vst [vmem:[%s1175_s15 + $0xa0] sm:$0xff] %v393_v3 }
 0x157   : > { %v690_v4 = vpop.f32.mrb[6].mxu0  ;;  %v714_v5 = vpop.f32.mrb[6].mxu1 }
 0x158   : > { %459 = vst [vmem:[%s1175_s15 + $0x38] sm:$0xff] %v690_v4  ;;  %475 = vst [vmem:[%s1175_s15 + $0xb8] sm:$0xff] %v714_v5  ;;  %v323_v6 = vpop.f32.mrb[7].mxu0  ;;  %v403_v7 = vpop.f32.mrb[7].mxu1 }
 0x159   : > { %458 = vst [vmem:[%s1175_s15 + $0x30] sm:$0xff] %v323_v6  ;;  %474 = vst [vmem:[%s1175_s15 + $0xb0] sm:$0xff] %v403_v7 }
 0x15b   : > { %v693_v8 = vpop.f32.mrb[8].mxu0  ;;  %v717_v9 = vpop.f32.mrb[8].mxu1 }
 0x15c   : > { %461 = vst [vmem:[%s1175_s15 + $0x48] sm:$0xff] %v693_v8  ;;  %477 = vst [vmem:[%s1175_s15 + $0xc8] sm:$0xff] %v717_v9  ;;  %v333_v10 = vpop.f32.mrb[9].mxu0  ;;  %v413_v11 = vpop.f32.mrb[9].mxu1 }
 0x15d   : > { %460 = vst [vmem:[%s1175_s15 + $0x40] sm:$0xff] %v333_v10  ;;  %476 = vst [vmem:[%s1175_s15 + $0xc0] sm:$0xff] %v413_v11 }
 0x15f   : > { %v696_v12 = vpop.f32.mrb[10].mxu0  ;;  %v720_v13 = vpop.f32.mrb[10].mxu1 }
 0x160   : > { %463 = vst [vmem:[%s1175_s15 + $0x58] sm:$0xff] %v696_v12  ;;  %479 = vst [vmem:[%s1175_s15 + $0xd8] sm:$0xff] %v720_v13  ;;  %v343_v14 = vpop.f32.mrb[11].mxu0  ;;  %v423_v15 = vpop.f32.mrb[11].mxu1 }
 0x161   : > { %462 = vst [vmem:[%s1175_s15 + $0x50] sm:$0xff] %v343_v14  ;;  %478 = vst [vmem:[%s1175_s15 + $0xd0] sm:$0xff] %v423_v15 }
 0x163   : > { %v699_v16 = vpop.f32.mrb[12].mxu0  ;;  %v723_v17 = vpop.f32.mrb[12].mxu1 }
 0x164   : > { %465 = vst [vmem:[%s1175_s15 + $0x68] sm:$0xff] %v699_v16  ;;  %481 = vst [vmem:[%s1175_s15 + $0xe8] sm:$0xff] %v723_v17  ;;  %v353_v18 = vpop.f32.mrb[13].mxu0  ;;  %v433_v19 = vpop.f32.mrb[13].mxu1 }
 0x165   : > { %464 = vst [vmem:[%s1175_s15 + $0x60] sm:$0xff] %v353_v18  ;;  %480 = vst [vmem:[%s1175_s15 + $0xe0] sm:$0xff] %v433_v19 }
 0x167   : > { %v702_v20 = vpop.f32.mrb[14].mxu0  ;;  %v726_v21 = vpop.f32.mrb[14].mxu1 }
 0x168   : > { %467 = vst [vmem:[%s1175_s15 + $0x78] sm:$0xff] %v702_v20  ;;  %483 = vst [vmem:[%s1175_s15 + $0xf8] sm:$0xff] %v726_v21  ;;  %v363_v22 = vpop.f32.mrb[15].mxu0  ;;  %v443_v23 = vpop.f32.mrb[15].mxu1 }
 0x169   : > { %466 = vst [vmem:[%s1175_s15 + $0x70] sm:$0xff] %v363_v22  ;;  %482 = vst [vmem:[%s1175_s15 + $0xf0] sm:$0xff] %v443_v23 }
 0x16a   : > { %907 = shalt.err (!%p904_p7)
}
 0x16b   : > { %s908_s20 = scalar_lea.hbm %s1210_s22, 4096  ;;  %s912_s25 = scalar_lea.hbm %s1261_s2, 16384 }
 0x16c   : > { %p909_p9 = scmp.ne.s32.totalorder %s1210_s22, %s908_s20  ;;  %p913_p5 = scmp.lt.u32.totalorder %s1210_s22, %s1261_s2 }
 0x16d   : > { %p914_p10 = scmp.lt.u32.totalorder %s912_s25, %s908_s20  ;;  %p916_p4 = scmp.lt.u32.totalorder %s908_s20, %s1210_s22 }
 0x16e   : > { %p910_p1 = pnand %p909_p9, %p1074_p12 }
 0x16f   : > { %p915_p2 = por %p914_p10, %p913_p5 }
 0x170   : > { %p911_p0 = pneg %p910_p1 }
 0x171   : > { %p917_p6 = por %p916_p4, %p915_p2 }
 0x173   : > { %p918_p8 = pnand %p917_p6, %p911_p0 }
 0x175   : > { %921 = shalt.err (!%p918_p8)
}
 0x176   : > { %s971_s30 = smov 128   ;;  %s972_s23 = smov 8  }
 0x177   : > { %781 = dma.vmem_to_hbm [thread:$0]  (%p1074_p12), %s1212_s4, 4096, %s1210_s22, %s485_s13, %s971_s30, %s971_s30, %s972_s23  }
 0x178 PF: > { %p798_p11 = scmp.ge.s32.totalorder %s964_s12, 2  ;;  %s513_s15 = sand.u32 1, %s952_s9  }
 0x179   : > { %p1276_p13 = scmp.ne.s32.totalorder %s1266_s16, 0  ;;  %s514_s17 = scalar_lea.sflag [#allocation4], %s513_s15 }
 0x17b   : > { %p792_p3 = pnand %p798_p11, %p1276_p13 }
 0x17d   : > { %947 = dma.done.wait (!%p792_p3), %s514_s17, 4096  }
 0x17e   : > { %949 = vsyncadd (!%p792_p3), %s514_s17, 4294963200  ;;  %p16_p7 = scmp.ge.s32.totalorder %s1041_s21, 6   ;;  %s1277_s9 = smov %s956_s10 }
 0x17f   : > { %s1278_s10 = smov %s960_s11  ;;  %s1279_s11 = smov %s1070_s8 }
 0x180   : > { %s1280_s12 = smov %s1041_s21  ;;  %18 = sbr.rel (!%p16_p7) target bundleno = 6 (0x6), region = 77 }
 0x187   :  { %519 = vsyncpa [#allocation3], 1 }
 0x188   :  { %521 = vsyncpa [#allocation3 + $0x1], 1 }
 0x189   :  { %522 = vsyncpa [#allocation6], 1 }
 0x18a   :  { %523 = vsyncpa [#allocation4], 1 }
 0x18b   :  { %525 = vsyncpa [#allocation4 + $0x1], 1 }

</bundles_post_ra>
